<compile_context>
chip_gen: v7x
topology: tpu7x:2x2x1
jax: 0.10.0
libtpu: 0.0.40
codegen_flags: <defaults>
</compile_context>

<pallas_src>
import functools

import jax
import jax.numpy as jnp
from jax.experimental import pallas as pl
from jax.experimental.pallas import tpu as pltpu


# ----------------------------- Pallas kernel ------------------------------

def fused_forward_kernel(patches_ref, pool_ref, conv_w_ref, conv_b_ref,
                         proj_w_ref, proj_b_ref,
                         meta_ref, csv_w_ref, csv_b_ref,
                         cls_wi_ref, cls_wm_ref, cls_b_ref,
                         out_ref, yhat_ref):
    """Whole BaselinePreTrain forward in one kernel.

    patches: (B*HW, Cin*9) bf16, pool: (B, B*HW) f32 block-diag 1/HW matrix.
    out_ref: (B, 2*ncls) f32 = [logits | softmax(logits)];  yhat_ref: (B,1) i32.
    """
    # --- synthetic backbone: conv3x3 (as one big im2col matmul) + ReLU -----
    acc = jnp.dot(patches_ref[...], conv_w_ref[...],
                  preferred_element_type=jnp.float32)          # (B*HW, Cmid)
    acc = jnp.maximum(acc + conv_b_ref[...], 0.0)

    # --- global average pool per image, done on the MXU --------------------
    pooled = jnp.dot(pool_ref[...], acc,
                     preferred_element_type=jnp.float32)       # (B, Cmid)

    # --- backbone projection to backbone_dim -------------------------------
    img_feat = jnp.dot(pooled, proj_w_ref[...],
                       preferred_element_type=jnp.float32) + proj_b_ref[...]

    # --- csv branch: Linear (BN folded in) -> ReLU (Dropout = identity) ----
    meta_feat = jnp.maximum(
        jnp.dot(meta_ref[...], csv_w_ref[...],
                preferred_element_type=jnp.float32) + csv_b_ref[...], 0.0)

    # --- classification: concat absorbed by split classifier weight --------
    logits = (jnp.dot(img_feat, cls_wi_ref[...],
                      preferred_element_type=jnp.float32)
              + jnp.dot(meta_feat, cls_wm_ref[...],
                        preferred_element_type=jnp.float32)
              + cls_b_ref[...])                                # (B, ncls)

    # --- produce_out: softmax + argmax --------------------------------------
    m = jnp.max(logits, axis=1, keepdims=True)
    e = jnp.exp(logits - m)
    inv = pl.reciprocal(jnp.sum(e, axis=1, keepdims=True), approx=True)  # EUP
    prob = e * inv

    ncls = logits.shape[1]
    idx = jax.lax.broadcasted_iota(jnp.int32, logits.shape, 1)
    masked = jnp.where(logits == m, idx, ncls)                 # first-occurrence
    yhat_ref[...] = jnp.min(masked, axis=1, keepdims=True)

    # lane-dense combined output slab: [logits | prob]
    out_ref[...] = jnp.concatenate([logits, prob], axis=1)


# ------------------------------ glue (JAX) --------------------------------

_VMEM = pl.BlockSpec(memory_space=pltpu.MemorySpace.VMEM)


def im2col_3x3_nhwc(x_nchw):
    """NCHW image -> (B*H*W, 9*Cin) patches (padding=1, stride=1).

    Transposes the 1x image (not the 9x-expanded patch tensor) to NHWC first,
    so no large XLA transpose/copy precedes the kernel.
    """
    B, C, H, W = x_nchw.shape
    x = jnp.transpose(x_nchw, (0, 2, 3, 1))                    # (B, H, W, C)
    xp = jnp.pad(x, ((0, 0), (1, 1), (1, 1), (0, 0)))
    shards = [xp[:, i:i + H, j:j + W, :] for i in range(3) for j in range(3)]
    p = jnp.concatenate(shards, axis=-1)                       # (B, H, W, 9*C)
    return p.reshape(B * H * W, 9 * C)


def pallas_fused_forward(patches, pool, conv_w, conv_b, proj_w, proj_b,
                         meta, csv_w, csv_b, cls_w_img, cls_w_meta, cls_b):
    B = pool.shape[0]
    ncls = cls_b.shape[1]
    slab, yhat = pl.pallas_call(
        fused_forward_kernel,
        out_shape=(
            jax.ShapeDtypeStruct((B, 2 * ncls), jnp.float32),
            jax.ShapeDtypeStruct((B, 1), jnp.int32),
        ),
        in_specs=[_VMEM] * 12,
        out_specs=(_VMEM, _VMEM),
    )(patches, pool, conv_w, conv_b, proj_w, proj_b,
      meta, csv_w, csv_b, cls_w_img, cls_w_meta, cls_b)
    return slab[:, :ncls], slab[:, ncls:], yhat


# ----------------------------- model wrapper ------------------------------

class BaselinePreTrainPallas:
    """JAX/Pallas re-implementation of BaselinePreTrain (with_meta_net=True)."""

    def __init__(self, *, in_channels=4, conv_channels=8, backbone_dim=32,
                 no_columns=8, column_out_dim=16, output_size=4, seed=0):
        key = jax.random.PRNGKey(seed)
        ks = jax.random.split(key, 8)
        s = 0.1
        # synthetic backbone: conv3x3 -> ReLU -> GAP -> Linear(backbone_dim)
        conv_w = (s * jax.random.normal(
            ks[0], (in_channels * 9, conv_channels))).astype(jnp.float32)
        self.conv_w_bf16 = conv_w.astype(jnp.bfloat16)          # MXU input
        self.conv_b = (s * jax.random.normal(
            ks[1], (1, conv_channels))).astype(jnp.float32)
        self.proj_w = (s * jax.random.normal(
            ks[2], (conv_channels, backbone_dim))).astype(jnp.float32)
        self.proj_b = (s * jax.random.normal(
            ks[3], (1, backbone_dim))).astype(jnp.float32)
        # csv branch: Linear(no_columns, column_out_dim) + BN + ReLU + Dropout
        csv_w = (s * jax.random.normal(
            ks[4], (no_columns, column_out_dim))).astype(jnp.float32)
        csv_b = (s * jax.random.normal(
            ks[5], (1, column_out_dim))).astype(jnp.float32)
        bn_gamma = jnp.ones((1, column_out_dim), jnp.float32)
        bn_beta = jnp.zeros((1, column_out_dim), jnp.float32)
        bn_mean = jnp.zeros((1, column_out_dim), jnp.float32)
        bn_var = jnp.ones((1, column_out_dim), jnp.float32)
        # fold eval-mode BatchNorm1d into the csv Linear (exact in eval mode)
        scale = bn_gamma * jax.lax.rsqrt(bn_var + 1e-5)
        self.csv_w = csv_w * scale
        self.csv_b = (csv_b - bn_mean) * scale + bn_beta
        # classification: Linear(backbone_dim + column_out_dim, output_size)
        cls_w = (s * jax.random.normal(
            ks[6], (backbone_dim + column_out_dim, output_size))
        ).astype(jnp.float32)
        self.cls_w_img = cls_w[:backbone_dim]                   # absorbs concat
        self.cls_w_meta = cls_w[backbone_dim:]
        self.cls_b = (s * jax.random.normal(
            ks[7], (1, output_size))).astype(jnp.float32)

    @functools.partial(jax.jit, static_argnums=0)
    def forward(self, image, meta):
        B, C, H, W = image.shape
        HW = H * W
        # im2col patches for the single fused conv matmul (bf16 for the MXU)
        patches = im2col_3x3_nhwc(image).astype(jnp.bfloat16)   # (B*HW, 9*C)
        # block-diagonal pooling matrix: pool[b, b*HW:(b+1)*HW] = 1/HW
        pool = jnp.kron(jnp.eye(B, dtype=jnp.float32),
                        jnp.full((1, HW), 1.0 / HW, jnp.float32))
        logits, y_prob, y_hat = pallas_fused_forward(
            patches, pool, self.conv_w_bf16, self.conv_b,
            self.proj_w, self.proj_b,
            meta.astype(jnp.float32), self.csv_w, self.csv_b,
            self.cls_w_img, self.cls_w_meta, self.cls_b)
        return {"logits": logits, "Y_prob": y_prob, "Y_hat": y_hat[:, 0]}


if __name__ == "__main__":
    B, C, H, W = 2, 4, 16, 16
    NO_COLUMNS = 8

    key = jax.random.PRNGKey(0)
    k_img, k_meta = jax.random.split(key)
    image = jax.random.normal(k_img, (B, C, H, W), jnp.float32)
    meta = jax.random.normal(k_meta, (B, NO_COLUMNS), jnp.float32)

    model = BaselinePreTrainPallas(
        in_channels=C, conv_channels=8, backbone_dim=32,
        no_columns=NO_COLUMNS, column_out_dim=16, output_size=4, seed=0)

    out = model.forward(image, meta)
    jax.block_until_ready(out)

    assert out["logits"].shape == (B, 4)
    assert out["Y_prob"].shape == (B, 4)
    assert out["Y_hat"].shape == (B,)
    # softmax rows sum to ~1 (approx reciprocal on EUP -> loose tolerance)
    assert jnp.allclose(jnp.sum(out["Y_prob"], axis=1), 1.0, atol=2e-3)
    # argmax consistent with logits
    assert jnp.array_equal(out["Y_hat"],
                           jnp.argmax(out["logits"], axis=1).astype(out["Y_hat"].dtype))

    print("KERNEL_OK")
</pallas_src>

<mosaic_0001>
module attributes {stable_mosaic.version = 11 : i64} {
  func.func @fused_forward_kernel(%arg0: memref<512x36xbf16, #tpu.memory_space<vmem>>, %arg1: memref<2x512xf32, #tpu.memory_space<vmem>>, %arg2: memref<36x8xbf16, #tpu.memory_space<vmem>>, %arg3: memref<1x8xf32, #tpu.memory_space<vmem>>, %arg4: memref<8x32xf32, #tpu.memory_space<vmem>>, %arg5: memref<1x32xf32, #tpu.memory_space<vmem>>, %arg6: memref<2x8xf32, #tpu.memory_space<vmem>>, %arg7: memref<8x16xf32, #tpu.memory_space<vmem>>, %arg8: memref<1x16xf32, #tpu.memory_space<vmem>>, %arg9: memref<32x4xf32, #tpu.memory_space<vmem>>, %arg10: memref<16x4xf32, #tpu.memory_space<vmem>>, %arg11: memref<1x4xf32, #tpu.memory_space<vmem>>, %arg12: memref<2x8xf32, #tpu.memory_space<vmem>>, %arg13: memref<2x1xi32, #tpu.memory_space<vmem>>) attributes {dimension_semantics = [], scalar_prefetch = 0 : i64, scratch_operands = 0 : i64, tpu.core_type = #tpu.core_type<tc>} {
    %c0 = arith.constant 0 : index
    %c0_0 = arith.constant 0 : index
    %0 = vector.load %arg0[%c0, %c0_0] : memref<512x36xbf16, #tpu.memory_space<vmem>>, vector<512x36xbf16>
    %c0_1 = arith.constant 0 : index
    %c0_2 = arith.constant 0 : index
    %1 = vector.load %arg2[%c0_1, %c0_2] : memref<36x8xbf16, #tpu.memory_space<vmem>>, vector<36x8xbf16>
    %cst = arith.constant dense<0.000000e+00> : vector<512x8xf32>
    %2 = tpu.matmul %0, %1, %cst {dimension_numbers = #tpu.dot_dimension_numbers<[1], [0], [0], [1], [0, 0, 1, 1], [], []>} : vector<512x36xbf16>, vector<36x8xbf16>, vector<512x8xf32> -> vector<512x8xf32>
    %c0_3 = arith.constant 0 : index
    %c0_4 = arith.constant 0 : index
    %3 = vector.load %arg3[%c0_3, %c0_4] : memref<1x8xf32, #tpu.memory_space<vmem>>, vector<1x8xf32>
    %4 = vector.broadcast %3 : vector<1x8xf32> to vector<512x8xf32>
    %5 = arith.addf %2, %4 : vector<512x8xf32>
    %cst_5 = arith.constant 0.000000e+00 : f32
    %6 = vector.broadcast %cst_5 : f32 to vector<512x8xf32>
    %7 = arith.maximumf %5, %6 : vector<512x8xf32>
    %c0_6 = arith.constant 0 : index
    %c0_7 = arith.constant 0 : index
    %8 = vector.load %arg1[%c0_6, %c0_7] : memref<2x512xf32, #tpu.memory_space<vmem>>, vector<2x512xf32>
    %cst_8 = arith.constant dense<0.000000e+00> : vector<2x8xf32>
    %9 = tpu.matmul %8, %7, %cst_8 {dimension_numbers = #tpu.dot_dimension_numbers<[1], [0], [0], [1], [0, 0, 1, 1], [], []>} : vector<2x512xf32>, vector<512x8xf32>, vector<2x8xf32> -> vector<2x8xf32>
    %c0_9 = arith.constant 0 : index
    %c0_10 = arith.constant 0 : index
    %10 = vector.load %arg4[%c0_9, %c0_10] : memref<8x32xf32, #tpu.memory_space<vmem>>, vector<8x32xf32>
    %cst_11 = arith.constant dense<0.000000e+00> : vector<2x32xf32>
    %11 = tpu.matmul %9, %10, %cst_11 {dimension_numbers = #tpu.dot_dimension_numbers<[1], [0], [0], [1], [0, 0, 1, 1], [], []>} : vector<2x8xf32>, vector<8x32xf32>, vector<2x32xf32> -> vector<2x32xf32>
    %c0_12 = arith.constant 0 : index
    %c0_13 = arith.constant 0 : index
    %12 = vector.load %arg5[%c0_12, %c0_13] : memref<1x32xf32, #tpu.memory_space<vmem>>, vector<1x32xf32>
    %13 = vector.broadcast %12 : vector<1x32xf32> to vector<2x32xf32>
    %14 = arith.addf %11, %13 : vector<2x32xf32>
    %c0_14 = arith.constant 0 : index
    %c0_15 = arith.constant 0 : index
    %15 = vector.load %arg6[%c0_14, %c0_15] : memref<2x8xf32, #tpu.memory_space<vmem>>, vector<2x8xf32>
    %c0_16 = arith.constant 0 : index
    %c0_17 = arith.constant 0 : index
    %16 = vector.load %arg7[%c0_16, %c0_17] : memref<8x16xf32, #tpu.memory_space<vmem>>, vector<8x16xf32>
    %cst_18 = arith.constant dense<0.000000e+00> : vector<2x16xf32>
    %17 = tpu.matmul %15, %16, %cst_18 {dimension_numbers = #tpu.dot_dimension_numbers<[1], [0], [0], [1], [0, 0, 1, 1], [], []>} : vector<2x8xf32>, vector<8x16xf32>, vector<2x16xf32> -> vector<2x16xf32>
    %c0_19 = arith.constant 0 : index
    %c0_20 = arith.constant 0 : index
    %18 = vector.load %arg8[%c0_19, %c0_20] : memref<1x16xf32, #tpu.memory_space<vmem>>, vector<1x16xf32>
    %19 = vector.broadcast %18 : vector<1x16xf32> to vector<2x16xf32>
    %20 = arith.addf %17, %19 : vector<2x16xf32>
    %cst_21 = arith.constant 0.000000e+00 : f32
    %21 = vector.broadcast %cst_21 : f32 to vector<2x16xf32>
    %22 = arith.maximumf %20, %21 : vector<2x16xf32>
    %c0_22 = arith.constant 0 : index
    %c0_23 = arith.constant 0 : index
    %23 = vector.load %arg9[%c0_22, %c0_23] : memref<32x4xf32, #tpu.memory_space<vmem>>, vector<32x4xf32>
    %cst_24 = arith.constant dense<0.000000e+00> : vector<2x4xf32>
    %24 = tpu.matmul %14, %23, %cst_24 {dimension_numbers = #tpu.dot_dimension_numbers<[1], [0], [0], [1], [0, 0, 1, 1], [], []>} : vector<2x32xf32>, vector<32x4xf32>, vector<2x4xf32> -> vector<2x4xf32>
    %c0_25 = arith.constant 0 : index
    %c0_26 = arith.constant 0 : index
    %25 = vector.load %arg10[%c0_25, %c0_26] : memref<16x4xf32, #tpu.memory_space<vmem>>, vector<16x4xf32>
    %cst_27 = arith.constant dense<0.000000e+00> : vector<2x4xf32>
    %26 = tpu.matmul %22, %25, %cst_27 {dimension_numbers = #tpu.dot_dimension_numbers<[1], [0], [0], [1], [0, 0, 1, 1], [], []>} : vector<2x16xf32>, vector<16x4xf32>, vector<2x4xf32> -> vector<2x4xf32>
    %27 = arith.addf %24, %26 : vector<2x4xf32>
    %c0_28 = arith.constant 0 : index
    %c0_29 = arith.constant 0 : index
    %28 = vector.load %arg11[%c0_28, %c0_29] : memref<1x4xf32, #tpu.memory_space<vmem>>, vector<1x4xf32>
    %29 = vector.broadcast %28 : vector<1x4xf32> to vector<2x4xf32>
    %30 = arith.addf %27, %29 : vector<2x4xf32>
    %cst_30 = arith.constant dense<0xFF800000> : vector<2xf32>
    %31 = vector.multi_reduction <maximumf>, %30, %cst_30 [1] : vector<2x4xf32> to vector<2xf32>
    %32 = vector.shape_cast %31 : vector<2xf32> to vector<2x1xf32>
    %33 = vector.broadcast %32 : vector<2x1xf32> to vector<2x4xf32>
    %34 = arith.subf %30, %33 : vector<2x4xf32>
    %35 = math.exp %34 : vector<2x4xf32>
    %cst_31 = arith.constant dense<0.000000e+00> : vector<2xf32>
    %36 = vector.multi_reduction <add>, %35, %cst_31 [1] : vector<2x4xf32> to vector<2xf32>
    %37 = vector.shape_cast %36 : vector<2xf32> to vector<2x1xf32>
    %38 = tpu.reciprocal %37 {approx = true} : vector<2x1xf32> -> vector<2x1xf32>
    %39 = vector.broadcast %38 : vector<2x1xf32> to vector<2x4xf32>
    %40 = arith.mulf %35, %39 : vector<2x4xf32>
    %41 = tpu.iota {dimensions = array<i32: 1>} : vector<2x4xi32>
    %42 = vector.broadcast %32 : vector<2x1xf32> to vector<2x4xf32>
    %43 = arith.cmpf oeq, %30, %42 : vector<2x4xf32>
    %c4_i32 = arith.constant 4 : i32
    %44 = vector.broadcast %c4_i32 : i32 to vector<2x4xi32>
    %45 = arith.select %43, %41, %44 : vector<2x4xi1>, vector<2x4xi32>
    %cst_32 = arith.constant dense<2147483647> : vector<2xi32>
    %46 = vector.multi_reduction <minsi>, %45, %cst_32 [1] : vector<2x4xi32> to vector<2xi32>
    %47 = vector.shape_cast %46 : vector<2xi32> to vector<2x1xi32>
    %c0_33 = arith.constant 0 : index
    %c0_34 = arith.constant 0 : index
    %48 = vector.load %arg13[%c0_33, %c0_34] : memref<2x1xi32, #tpu.memory_space<vmem>>, vector<2x1xi32>
    tpu.vector_store %arg13[%c0_33, %c0_34], %47 {strides = array<i32>} : memref<2x1xi32, #tpu.memory_space<vmem>>, vector<2x1xi32>,
    %49 = tpu.concatenate %30, %40 in 1 : vector<2x4xf32>, vector<2x4xf32> -> vector<2x8xf32>
    %c0_35 = arith.constant 0 : index
    %c0_36 = arith.constant 0 : index
    %50 = vector.load %arg12[%c0_35, %c0_36] : memref<2x8xf32, #tpu.memory_space<vmem>>, vector<2x8xf32>
    tpu.vector_store %arg12[%c0_35, %c0_36], %49 {strides = array<i32>} : memref<2x8xf32, #tpu.memory_space<vmem>>, vector<2x8xf32>,
    return
  }
}

</mosaic_0001>

<bundles_post_ra>
// kernel: forward.1
= control target key start
LH: loop header
LB: loop body
LE: loop exit
PB: predicated region body
PF: predicated region fallthrough
CT: control target
= control target key end

     0   :  { %vm295_vm0 = vcmask 293888   ;;  %vm392_vm1 = vcmask 1041408   ;;  %v1704_v36 = vmov 1983009808   ;;  %v755_v38 = vlaneseq  ;;  %s2097_s2 = inlined_call_operand.vmem [shape: bf16[36,8], index: 2, kind: input, shape index: {}]   ;;  %s2098_s0 = inlined_call_operand.vmem [shape: bf16[512,36], index: 0, kind: input, shape index: {}]   ;;  %s2099_s1 = inlined_call_operand.vmem [shape: f32[2,512], index: 1, kind: input, shape index: {}]   ;;  %s2100_s3 = inlined_call_operand.vmem [shape: f32[1,8], index: 3, kind: input, shape index: {}]   ;;  %s2101_s4 = inlined_call_operand.vmem [shape: f32[8,32], index: 4, kind: input, shape index: {}]   ;;  %s2102_s7 = inlined_call_operand.vmem [shape: f32[8,16], index: 7, kind: input, shape index: {}]   ;;  %s2103_s6 = inlined_call_operand.vmem [shape: f32[2,8], index: 6, kind: input, shape index: {}]   ;;  %s2104_s10 = inlined_call_operand.vmem [shape: f32[16,4], index: 10, kind: input, shape index: {}]   ;;  %s2105_s8 = inlined_call_operand.vmem [shape: f32[1,16], index: 8, kind: input, shape index: {}]   ;;  %s2106_s9 = inlined_call_operand.vmem [shape: f32[32,4], index: 9, kind: input, shape index: {}]   ;;  %s2107_s5 = inlined_call_operand.vmem [shape: f32[1,32], index: 5, kind: input, shape index: {}]   ;;  %s2108_s11 = inlined_call_operand.vmem [shape: f32[1,4], index: 11, kind: input, shape index: {}]   ;;  %s2109_s12 = inlined_call_operand.vmem [shape: f32[2,8], index: 12, kind: output, shape index: {0}]   ;;  %s2110_s13 = inlined_call_operand.vmem [shape: s32[2,1], index: 13, kind: output, shape index: {1}]  }
   0x1   :  { %v1664_v0 = vld [vmem:[%s2097_s2] sm:$0xff]   ;;  %v1665_v1 = vld [vmem:[%s2097_s2 + $0x8] sm:$0xff]   ;;  %v1666_v2 = vld [vmem:[%s2097_s2 + $0x10] ss:$0 sps:$4 sm:$0x33]   ;;  %v753_v37 = vunpack.c.l.s4 %v1704_v36  ;;  %vm1706_vm2 = vmmov 0  }
   0x2   :  { %1480 = vmatprep.subr.bf16.mxu0 %v1664_v0  ;;  %v1667_v3 = vld [vmem:[%s2098_s0] sm:$0xff]   ;;  %1651 = vmatprep.subr.bf16.mxu1 %v1664_v0  ;;  %v394_v4 = vsel %vm392_vm1, %v1666_v2, 0  ;;  %v1668_v5 = vld [vmem:[%s2098_s0 + $0x8] sm:$0xff]   ;;  %v1669_v6 = vld [vmem:[%s2098_s0 + $0x10] sm:$0xff]   ;;  %v756_v40 = vshrl.u32 %v755_v38, 7  ;;  %vm920_vm3 = vcmask 64512  }
   0x3   :  { %1481 = vmatpush3.bf16.msra.mxu0 %v1664_v0  ;;  %1654 = vmatpush3.bf16.msra.mxu1 %v1664_v0  ;;  %v1670_v7 = vld [vmem:[%s2098_s0 + $0x18] sm:$0xff]   ;;  %v1671_v8 = vld [vmem:[%s2098_s0 + $0x20] sm:$0xff]   ;;  %v1684_v10 = vld [vmem:[%s2098_s0 + $0xc8] sm:$0xff]   ;;  %v754_v39 = vunpack.c.0.s8 %v753_v37  ;;  %vm1083_vm4 = vcmask 130048   ;;  %vm1157_vm5 = vcmask 261120   ;;  %vm1239_vm6 = vcmask 25600  }
   0x4   :  { %1482 = vmatprep.subr.bf16.mxu0 %v1665_v1  ;;  %1486 = vmatprep.mubr.msk.bf16.mxu0 %vm295_vm0, %v1667_v3  ;;  %v1683_v9 = vld [vmem:[%s2098_s0 + $0xc0] sm:$0xff]   ;;  %v1687_v11 = vld [vmem:[%s2098_s0 + $0xd0] sm:$0xff]   ;;  %v1672_v12 = vld [vmem:[%s2098_s0 + $0x28] sm:$0xff]   ;;  %vm1276_vm9 = vcmask 31744   ;;  %vm1278_vm10 = vcmask 58368   ;;  %vm1270_vm11 = vcmask 1024  }
   0x5   :  { %1652 = vmatprep.subr.bf16.mxu1 %v1665_v1  ;;  %1534 = vmatprep.mubr.msk.bf16.mxu1 %vm295_vm0, %v1683_v9  ;;  %v1673_v13 = vld [vmem:[%s2098_s0 + $0x30] sm:$0xff]   ;;  %v1688_v14 = vld [vmem:[%s2098_s0 + $0xd8] sm:$0xff]   ;;  %v1691_v15 = vld [vmem:[%s2098_s0 + $0xe0] sm:$0xff]   ;;  %v757_v41 = vsub.s32 %v754_v39, %v756_v40 }
   0x6   :  { %v1674_v16 = vld [vmem:[%s2098_s0 + $0x38] sm:$0xff]   ;;  %v1692_v17 = vld [vmem:[%s2098_s0 + $0xe8] sm:$0xff]   ;;  %v1675_v18 = vld [vmem:[%s2098_s0 + $0x40] sm:$0xff]  }
   0x7   :  { %1483 = vmatpush3.bf16.msra.mxu0 %v1665_v1  ;;  %1655 = vmatpush3.bf16.msra.mxu1 %v1665_v1  ;;  %v1695_v19 = vld [vmem:[%s2098_s0 + $0xf0] sm:$0xff]   ;;  %v1676_v20 = vld [vmem:[%s2098_s0 + $0x48] sm:$0xff]   ;;  %v1696_v21 = vld [vmem:[%s2098_s0 + $0xf8] sm:$0xff]  }
   0x8   :  { %1657 = vmatprep.subr.msk.bf16.mxu0 %vm392_vm1, %v1666_v2  ;;  %1658 = vmatprep.subr.msk.bf16.mxu1 %vm392_vm1, %v1666_v2  ;;  %v1677_v22 = vld [vmem:[%s2098_s0 + $0x50] sm:$0xff]   ;;  %v1678_v23 = vld [vmem:[%s2098_s0 + $0x58] sm:$0xff]   ;;  %v1679_v24 = vld [vmem:[%s2098_s0 + $0x60] sm:$0xff]  }
   0x9   :  { %v1680_v25 = vld [vmem:[%s2098_s0 + $0x68] sm:$0xff]   ;;  %v1681_v26 = vld [vmem:[%s2098_s0 + $0x70] sm:$0xff]   ;;  %v1682_v27 = vld [vmem:[%s2098_s0 + $0x78] sm:$0xff]  }
   0xa   :  { %v1685_v28 = vld [vmem:[%s2098_s0 + $0x80] sm:$0xff]   ;;  %v1686_v29 = vld [vmem:[%s2098_s0 + $0x88] sm:$0xff]   ;;  %v1689_v30 = vld [vmem:[%s2098_s0 + $0x90] sm:$0xff]  }
   0xb   :  { %1485 = vmatpush3.bf16.msra.mxu0 %v394_v4  ;;  %1656 = vmatpush3.bf16.msra.mxu1 %v394_v4  ;;  %v1690_v31 = vld [vmem:[%s2098_s0 + $0x98] sm:$0xff]   ;;  %v1693_v32 = vld [vmem:[%s2098_s0 + $0xa0] sm:$0xff]   ;;  %v1694_v33 = vld [vmem:[%s2098_s0 + $0xa8] sm:$0xff]  }
   0xc   :  { %v1697_v34 = vld [vmem:[%s2098_s0 + $0xb0] sm:$0xff]   ;;  %v1698_v35 = vld [vmem:[%s2098_s0 + $0xb8] sm:$0xff]   ;;  %v749_v42 = vld [vmem:[%s2099_s1] sm:$0xff] }
   0xd   :  { %v1920_v43 = vrot.slane %v749_v42, %v757_v41  ;;  %v751_v45 = vcombine.high %v749_v42, %v749_v42  ;;  %v1929_v47 = vld [vmem:[%s2100_s3] ss:$0 sm:$0xff] }
   0xe   :  { %1487 = vmatmul.mubr.msk.bf16.vlgmr.msra.gmra.mrb[0].mxu0 %vm295_vm0, %v1668_v5  ;;  %1535 = vmatmul.mubr.msk.bf16.vlgmr.msra.gmra.mrb[0].mxu1 %vm295_vm0, %v1684_v10 }
   0xf   :  { %1490 = vmatprep.mubr.msk.bf16.mxu0 %vm295_vm0, %v1669_v6  ;;  %1538 = vmatprep.mubr.msk.bf16.mxu1 %vm295_vm0, %v1687_v11  ;;  %v766_v44 = vcombine.high %v1920_v43, %v1920_v43  ;;  %v1924_v46 = vrot.slane %v751_v45, %v757_v41 }
  0x16   :  { %1491 = vmatmul.mubr.msk.bf16.gmra.mrb[4].mxu0 %vm295_vm0, %v1670_v7  ;;  %1539 = vmatmul.mubr.msk.bf16.gmra.mrb[4].mxu1 %vm295_vm0, %v1688_v14 }
  0x17   :  { %1494 = vmatprep.mubr.msk.bf16.mxu0 %vm295_vm0, %v1671_v8  ;;  %1542 = vmatprep.mubr.msk.bf16.mxu1 %vm295_vm0, %v1691_v15 }
  0x1e   :  { %1495 = vmatmul.mubr.msk.bf16.gmra.mrb[8].mxu0 %vm295_vm0, %v1672_v12  ;;  %1543 = vmatmul.mubr.msk.bf16.gmra.mrb[8].mxu1 %vm295_vm0, %v1692_v17 }
  0x1f   :  { %1498 = vmatprep.mubr.msk.bf16.mxu0 %vm295_vm0, %v1673_v13  ;;  %1546 = vmatprep.mubr.msk.bf16.mxu1 %vm295_vm0, %v1695_v19 }
  0x26   :  { %1499 = vmatmul.mubr.msk.bf16.gmra.mrb[12].mxu0 %vm295_vm0, %v1674_v16  ;;  %1547 = vmatmul.mubr.msk.bf16.gmra.mrb[12].mxu1 %vm295_vm0, %v1696_v21 }
  0x27   :  { %1502 = vmatprep.mubr.msk.bf16.mxu0 %vm295_vm0, %v1675_v18  ;;  %836 = vmatprep.mubr.f32.mxu1 %v766_v44 }
  0x2e   :  { %1503 = vmatmul.mubr.msk.bf16.gmra.mrb[16].mxu0 %vm295_vm0, %v1676_v20 }
  0x2f   :  { %1506 = vmatprep.mubr.msk.bf16.mxu0 %vm295_vm0, %v1677_v22 }
  0x36   :  { %1507 = vmatmul.mubr.msk.bf16.gmra.mrb[20].mxu0 %vm295_vm0, %v1678_v23 }
  0x37   :  { %1510 = vmatprep.mubr.msk.bf16.mxu0 %vm295_vm0, %v1679_v24 }
  0x3e   :  { %1511 = vmatmul.mubr.msk.bf16.gmra.mrb[24].mxu0 %vm295_vm0, %v1680_v25 }
  0x3f   :  { %1514 = vmatprep.mubr.msk.bf16.mxu0 %vm295_vm0, %v1681_v26 }
  0x46   :  { %1515 = vmatmul.mubr.msk.bf16.gmra.mrb[28].mxu0 %vm295_vm0, %v1682_v27 }
  0x47   :  { %1518 = vmatprep.mubr.msk.bf16.mxu0 %vm295_vm0, %v1685_v28 }
  0x4e   :  { %1519 = vmatmul.mubr.msk.bf16.gmra.mrb[32].mxu0 %vm295_vm0, %v1686_v29 }
  0x4f   :  { %1522 = vmatprep.mubr.msk.bf16.mxu0 %vm295_vm0, %v1689_v30 }
  0x56   :  { %1523 = vmatmul.mubr.msk.bf16.gmra.mrb[36].mxu0 %vm295_vm0, %v1690_v31 }
  0x57   :  { %1526 = vmatprep.mubr.msk.bf16.mxu0 %vm295_vm0, %v1693_v32 }
  0x5e   :  { %1527 = vmatmul.mubr.msk.bf16.gmra.mrb[40].mxu0 %vm295_vm0, %v1694_v33 }
  0x5f   :  { %1530 = vmatprep.mubr.msk.bf16.mxu0 %vm295_vm0, %v1697_v34 }
  0x66   :  { %1531 = vmatmul.mubr.msk.bf16.gmra.mrb[44].mxu0 %vm295_vm0, %v1698_v35 }
  0xe1   :  { %v1488_v48 = vpop.f32.mrb[0].mxu0  ;;  %v1536_v63 = vpop.f32.mrb[0].mxu1 }
  0xe2   :  { %v439_v49 = vadd.f32 %v1488_v48, %v1929_v47  ;;  %v430_v50 = vpop.f32.mrb[1].mxu0  ;;  %v631_v2 = vadd.f32 %v1536_v63, %v1929_v47  ;;  %v622_v3 = vpop.f32.mrb[1].mxu1 }
  0xe3   :  { %v431_v51 = vadd.f32 %v1929_v47, %v430_v50  ;;  %v1489_v52 = vpop.f32.mrb[2].mxu0  ;;  %v623_v6 = vadd.f32 %v1929_v47, %v622_v3  ;;  %v1537_v7 = vpop.f32.mrb[2].mxu1 }
  0xe4   :  { %v442_v53 = vadd.f32 %v1489_v52, %v1929_v47  ;;  %v433_v54 = vpop.f32.mrb[3].mxu0  ;;  %v687_v56 = vmax.f32 %v439_v49, 0.0  ;;  %v735_v10 = vmax.f32 %v631_v2, 0.0  ;;  %v634_v11 = vadd.f32 %v1537_v7, %v1929_v47  ;;  %v625_v12 = vpop.f32.mrb[3].mxu1 }
  0xe5   :  { %v434_v55 = vadd.f32 %v1929_v47, %v433_v54  ;;  %v685_v58 = vmax.f32 %v431_v51, 0.0  ;;  %v733_v14 = vmax.f32 %v623_v6, 0.0  ;;  %v626_v15 = vadd.f32 %v1929_v47, %v625_v12 }
  0xe6   :  { %v688_v57 = vmax.f32 %v442_v53, 0.0  ;;  %v736_v18 = vmax.f32 %v634_v11, 0.0 }
  0xe7   :  { %v686_v59 = vmax.f32 %v434_v55, 0.0  ;;  %v734_v21 = vmax.f32 %v626_v15, 0.0 }
  0xe8   :  { %v1935_v60 = vpack.c.bf16 %v688_v57, %v687_v56  ;;  %v1949_v23 = vpack.c.bf16 %v736_v18, %v735_v10 }
  0xe9   :  { %v1937_v61 = vpack.c.bf16 %v686_v59, %v685_v58  ;;  %v1492_v62 = vpop.f32.mrb[4].mxu0  ;;  %v1953_v26 = vpack.c.bf16 %v734_v21, %v733_v14  ;;  %v1540_v27 = vpop.f32.mrb[4].mxu1 }
  0xea   :  { %v455_v0 = vadd.f32 %v1492_v62, %v1929_v47  ;;  %v446_v1 = vpop.f32.mrb[5].mxu0  ;;  %v647_v30 = vadd.f32 %v1540_v27, %v1929_v47  ;;  %v638_v31 = vpop.f32.mrb[5].mxu1 }
  0xeb   :  { %v447_v4 = vadd.f32 %v1929_v47, %v446_v1  ;;  %v1493_v5 = vpop.f32.mrb[6].mxu0  ;;  %v639_v34 = vadd.f32 %v1929_v47, %v638_v31  ;;  %v1541_v35 = vpop.f32.mrb[6].mxu1 }
  0xec   :  { %v458_v8 = vadd.f32 %v1493_v5, %v1929_v47  ;;  %v449_v9 = vpop.f32.mrb[7].mxu0  ;;  %v691_v16 = vmax.f32 %v455_v0, 0.0  ;;  %v739_v39 = vmax.f32 %v647_v30, 0.0  ;;  %v650_v40 = vadd.f32 %v1541_v35, %v1929_v47  ;;  %v641_v41 = vpop.f32.mrb[7].mxu1 }
  0xed   :  { %v450_v13 = vadd.f32 %v1929_v47, %v449_v9  ;;  %v689_v19 = vmax.f32 %v447_v4, 0.0  ;;  %v737_v44 = vmax.f32 %v639_v34, 0.0  ;;  %v642_v45 = vadd.f32 %v1929_v47, %v641_v41 }
  0xee   :  { %v692_v17 = vmax.f32 %v458_v8, 0.0  ;;  %v740_v50 = vmax.f32 %v650_v40, 0.0 }
  0xef   :  { %v690_v20 = vmax.f32 %v450_v13, 0.0  ;;  %v738_v53 = vmax.f32 %v642_v45, 0.0 }
  0xf0   :  { %v1947_v22 = vpack.c.bf16 %v692_v17, %v691_v16  ;;  %v1965_v55 = vpack.c.bf16 %v740_v50, %v739_v39 }
  0xf1   :  { %v1951_v24 = vpack.c.bf16 %v690_v20, %v689_v19  ;;  %v1496_v25 = vpop.f32.mrb[8].mxu0  ;;  %v1969_v58 = vpack.c.bf16 %v738_v53, %v737_v44  ;;  %v1544_v59 = vpop.f32.mrb[8].mxu1 }
  0xf2   :  { %v471_v28 = vadd.f32 %v1496_v25, %v1929_v47  ;;  %v462_v29 = vpop.f32.mrb[9].mxu0  ;;  %v663_v0 = vadd.f32 %v1544_v59, %v1929_v47  ;;  %v654_v1 = vpop.f32.mrb[9].mxu1 }
  0xf3   :  { %v463_v32 = vadd.f32 %v1929_v47, %v462_v29  ;;  %v1497_v33 = vpop.f32.mrb[10].mxu0  ;;  %v655_v4 = vadd.f32 %v1929_v47, %v654_v1  ;;  %v1545_v5 = vpop.f32.mrb[10].mxu1 }
  0xf4   :  { %v474_v36 = vadd.f32 %v1497_v33, %v1929_v47  ;;  %v465_v37 = vpop.f32.mrb[11].mxu0  ;;  %v695_v48 = vmax.f32 %v471_v28, 0.0  ;;  %v743_v8 = vmax.f32 %v663_v0, 0.0  ;;  %v666_v9 = vadd.f32 %v1545_v5, %v1929_v47  ;;  %v657_v10 = vpop.f32.mrb[11].mxu1 }
  0xf5   :  { %v466_v42 = vadd.f32 %v1929_v47, %v465_v37  ;;  %v693_v51 = vmax.f32 %v463_v32, 0.0  ;;  %v741_v12 = vmax.f32 %v655_v4, 0.0  ;;  %v658_v13 = vadd.f32 %v1929_v47, %v657_v10 }
  0xf6   :  { %v696_v49 = vmax.f32 %v474_v36, 0.0  ;;  %v744_v16 = vmax.f32 %v666_v9, 0.0 }
  0xf7   :  { %v694_v52 = vmax.f32 %v466_v42, 0.0  ;;  %v742_v19 = vmax.f32 %v658_v13, 0.0 }
  0xf8   :  { %v1963_v54 = vpack.c.bf16 %v696_v49, %v695_v48  ;;  %v1981_v21 = vpack.c.bf16 %v744_v16, %v743_v8 }
  0xf9   :  { %v1967_v56 = vpack.c.bf16 %v694_v52, %v693_v51  ;;  %v1500_v57 = vpop.f32.mrb[12].mxu0  ;;  %v1985_v28 = vpack.c.bf16 %v742_v19, %v741_v12  ;;  %v1548_v29 = vpop.f32.mrb[12].mxu1 }
  0xfa   :  { %v487_v62 = vadd.f32 %v1500_v57, %v1929_v47  ;;  %v478_v63 = vpop.f32.mrb[13].mxu0  ;;  %v679_v32 = vadd.f32 %v1548_v29, %v1929_v47  ;;  %v670_v33 = vpop.f32.mrb[13].mxu1 }
  0xfb   :  { %v479_v2 = vadd.f32 %v1929_v47, %v478_v63  ;;  %v1501_v3 = vpop.f32.mrb[14].mxu0  ;;  %v671_v36 = vadd.f32 %v1929_v47, %v670_v33  ;;  %v1549_v37 = vpop.f32.mrb[14].mxu1 }
  0xfc   :  { %v490_v6 = vadd.f32 %v1501_v3, %v1929_v47  ;;  %v481_v7 = vpop.f32.mrb[15].mxu0  ;;  %v699_v14 = vmax.f32 %v487_v62, 0.0  ;;  %v747_v41 = vmax.f32 %v679_v32, 0.0  ;;  %v682_v42 = vadd.f32 %v1549_v37, %v1929_v47  ;;  %v673_v44 = vpop.f32.mrb[15].mxu1 }
  0xfd   :  { %v482_v11 = vadd.f32 %v1929_v47, %v481_v7  ;;  %v697_v17 = vmax.f32 %v479_v2, 0.0  ;;  %v745_v48 = vmax.f32 %v671_v36, 0.0  ;;  %v674_v49 = vadd.f32 %v1929_v47, %v673_v44 }
  0xfe   :  { %v700_v15 = vmax.f32 %v490_v6, 0.0  ;;  %v748_v52 = vmax.f32 %v682_v42, 0.0 }
  0xff   :  { %v698_v18 = vmax.f32 %v482_v11, 0.0  ;;  %v746_v59 = vmax.f32 %v674_v49, 0.0 }
 0x100   :  { %v1979_v20 = vpack.c.bf16 %v700_v15, %v699_v14  ;;  %v1995_v63 = vpack.c.bf16 %v748_v52, %v747_v41 }
 0x101   :  { %v1983_v25 = vpack.c.bf16 %v698_v18, %v697_v17  ;;  %v1504_v27 = vpop.f32.mrb[16].mxu0  ;;  %v1997_v2 = vpack.c.bf16 %v746_v59, %v745_v48 }
 0x102   :  { %v503_v30 = vadd.f32 %v1504_v27, %v1929_v47  ;;  %v494_v31 = vpop.f32.mrb[17].mxu0 }
 0x103   :  { %v495_v34 = vadd.f32 %v1929_v47, %v494_v31  ;;  %v1505_v35 = vpop.f32.mrb[18].mxu0 }
 0x104   :  { %v506_v39 = vadd.f32 %v1505_v35, %v1929_v47  ;;  %v497_v40 = vpop.f32.mrb[19].mxu0  ;;  %v703_v50 = vmax.f32 %v503_v30, 0.0 }
 0x105   :  { %v498_v45 = vadd.f32 %v1929_v47, %v497_v40  ;;  %v701_v53 = vmax.f32 %v495_v34, 0.0 }
 0x106   :  { %v704_v51 = vmax.f32 %v506_v39, 0.0 }
 0x107   :  { %v702_v57 = vmax.f32 %v498_v45, 0.0 }
 0x108   :  { %v1582_v62 = vpack.c.bf16 %v704_v51, %v703_v50 }
 0x109   :  { %v1578_v0 = vpack.c.bf16 %v702_v57, %v701_v53  ;;  %v1508_v1 = vpop.f32.mrb[20].mxu0 }
 0x10a   :  { %v519_v3 = vadd.f32 %v1508_v1, %v1929_v47  ;;  %v510_v4 = vpop.f32.mrb[21].mxu0 }
 0x10b   :  { %v511_v5 = vadd.f32 %v1929_v47, %v510_v4  ;;  %v1509_v6 = vpop.f32.mrb[22].mxu0  ;;  %1579 = vmatprep.subr.bf16.mxu1 %v1578_v0 }
 0x10c   :  { %v522_v7 = vadd.f32 %v1509_v6, %v1929_v47  ;;  %v513_v8 = vpop.f32.mrb[23].mxu0  ;;  %1581 = vmatpush3.bf16.msra.mxu1 %v1937_v61  ;;  %v707_v10 = vmax.f32 %v519_v3, 0.0 }
 0x10d   :  { %v514_v9 = vadd.f32 %v1929_v47, %v513_v8  ;;  %1583 = vmatprep.subr.bf16.mxu1 %v1582_v62  ;;  %v705_v12 = vmax.f32 %v511_v5, 0.0 }
 0x10e   :  { %v708_v11 = vmax.f32 %v522_v7, 0.0  ;;  %v767_v7 = vcombine.high %v1924_v46, %v1924_v46 }
 0x10f   :  { %v706_v13 = vmax.f32 %v514_v9, 0.0 }
 0x110   :  { %v1590_v14 = vpack.c.bf16 %v708_v11, %v707_v10  ;;  %1585 = vmatpush3.bf16.msra.mxu1 %v1935_v60 }
 0x111   :  { %v1586_v15 = vpack.c.bf16 %v706_v13, %v705_v12  ;;  %v1512_v16 = vpop.f32.mrb[24].mxu0 }
 0x112   :  { %v535_v17 = vadd.f32 %v1512_v16, %v1929_v47  ;;  %v526_v18 = vpop.f32.mrb[25].mxu0 }
 0x113   :  { %v527_v19 = vadd.f32 %v1929_v47, %v526_v18  ;;  %v1513_v27 = vpop.f32.mrb[26].mxu0  ;;  %1587 = vmatprep.subr.bf16.mxu1 %v1586_v15 }
 0x114   :  { %v538_v61 = vadd.f32 %v1513_v27, %v1929_v47  ;;  %v529_v29 = vpop.f32.mrb[27].mxu0  ;;  %1589 = vmatpush3.bf16.msra.mxu1 %v1951_v24  ;;  %v711_v31 = vmax.f32 %v535_v17, 0.0 }
 0x115   :  { %v530_v30 = vadd.f32 %v1929_v47, %v529_v29  ;;  %1591 = vmatprep.subr.bf16.mxu1 %v1590_v14  ;;  %v709_v60 = vmax.f32 %v527_v19, 0.0 }
 0x116   :  { %v712_v32 = vmax.f32 %v538_v61, 0.0 }
 0x117   :  { %v710_v33 = vmax.f32 %v530_v30, 0.0 }
 0x118   :  { %v1598_v34 = vpack.c.bf16 %v712_v32, %v711_v31  ;;  %1593 = vmatpush3.bf16.msra.mxu1 %v1947_v22 }
 0x119   :  { %v1594_v35 = vpack.c.bf16 %v710_v33, %v709_v60  ;;  %v1516_v36 = vpop.f32.mrb[28].mxu0 }
 0x11a   :  { %v551_v37 = vadd.f32 %v1516_v36, %v1929_v47  ;;  %v542_v39 = vpop.f32.mrb[29].mxu0 }
 0x11b   :  { %v543_v40 = vadd.f32 %v1929_v47, %v542_v39  ;;  %v1517_v41 = vpop.f32.mrb[30].mxu0  ;;  %1595 = vmatprep.subr.bf16.mxu1 %v1594_v35 }
 0x11c   :  { %v554_v24 = vadd.f32 %v1517_v41, %v1929_v47  ;;  %v545_v42 = vpop.f32.mrb[31].mxu0  ;;  %1597 = vmatpush3.bf16.msra.mxu1 %v1967_v56  ;;  %v715_v45 = vmax.f32 %v551_v37, 0.0 }
 0x11d   :  { %v546_v44 = vadd.f32 %v1929_v47, %v545_v42  ;;  %1599 = vmatprep.subr.bf16.mxu1 %v1598_v34  ;;  %v713_v22 = vmax.f32 %v543_v40, 0.0 }
 0x11e   :  { %v716_v48 = vmax.f32 %v554_v24, 0.0 }
 0x11f   :  { %v714_v49 = vmax.f32 %v546_v44, 0.0 }
 0x120   :  { %v1606_v50 = vpack.c.bf16 %v716_v48, %v715_v45  ;;  %1601 = vmatpush3.bf16.msra.mxu1 %v1963_v54 }
 0x121   :  { %v1602_v51 = vpack.c.bf16 %v714_v49, %v713_v22  ;;  %v1520_v52 = vpop.f32.mrb[32].mxu0 }
 0x122   :  { %v567_v53 = vadd.f32 %v1520_v52, %v1929_v47  ;;  %v558_v57 = vpop.f32.mrb[33].mxu0 }
 0x123   :  { %v559_v59 = vadd.f32 %v1929_v47, %v558_v57  ;;  %v1521_v62 = vpop.f32.mrb[34].mxu0  ;;  %1603 = vmatprep.subr.bf16.mxu1 %v1602_v51  ;;  %v1705_v51 = vmov 0.0  }
 0x124   :  { %v719_v56 = vmax.f32 %v567_v53, 0.0  ;;  %v570_v0 = vadd.f32 %v1521_v62, %v1929_v47  ;;  %v561_v1 = vpop.f32.mrb[35].mxu0  ;;  %1605 = vmatpush3.bf16.msra.mxu1 %v1983_v25  ;;  %v994_v62 = vld [vmem:[%s2103_s6] sm:$0x3] }
 0x125   :  { %v562_v3 = vadd.f32 %v1929_v47, %v561_v1  ;;  %1607 = vmatprep.subr.bf16.mxu1 %v1606_v50  ;;  %v717_v54 = vmax.f32 %v559_v59, 0.0 }
 0x126   :  { %v720_v4 = vmax.f32 %v570_v0, 0.0  ;;  %v1082_v0 = vld [vmem:[%s2104_s10 + $0x8] sm:$0xff] }
 0x127   :  { %v718_v5 = vmax.f32 %v562_v3, 0.0  ;;  %v1707_v3 = vmov 0.0|0.0  }
 0x128   :  { %v1616_v6 = vpack.c.bf16 %v720_v4, %v719_v56  ;;  %1609 = vmatpush3.bf16.msra.mxu1 %v1979_v20  ;;  %v1081_v56 = vld [vmem:[%s2104_s10] sm:$0xff] }
 0x129   :  { %v1612_v8 = vpack.c.bf16 %v718_v5, %v717_v54  ;;  %v1524_v9 = vpop.f32.mrb[36].mxu0  ;;  %1611 = vmatprep.subr.bf16.mxu1 %v1953_v26  ;;  %v1643_v1 = vpack.c.bf16 %v1082_v0, %v1081_v56  ;;  %v1358_v5 = vld [vmem:[%s2105_s8] ss:$0 sm:$0xff] }
 0x12a   :  { %v583_v10 = vadd.f32 %v1524_v9, %v1929_v47  ;;  %v574_v11 = vpop.f32.mrb[37].mxu0 }
 0x12b   :  { %v575_v25 = vadd.f32 %v1929_v47, %v574_v11  ;;  %v1525_v12 = vpop.f32.mrb[38].mxu0  ;;  %837 = vmatmul.mubr.f32.vlgmr.msra.gmra.mrb[16].mxu1 %v1920_v43 }
 0x12c   :  { %v723_v13 = vmax.f32 %v583_v10, 0.0  ;;  %v586_v14 = vadd.f32 %v1525_v12, %v1929_v47  ;;  %v577_v15 = vpop.f32.mrb[39].mxu0  ;;  %1613 = vmatpush3.bf16.msra.mxu1 %v1612_v8  ;;  %906 = vmatprep.mubr.f32.mxu1 %v767_v7  ;;  %v1078_v7 = vld [vmem:[%s2106_s9 + $0x8] sm:$0xff]  ;;  %v1079_v12 = vld [vmem:[%s2106_s9 + $0x10] sm:$0xff] }
 0x12d   :  { %v578_v20 = vadd.f32 %v1929_v47, %v577_v15  ;;  %1615 = vmatprep.subr.bf16.mxu1 %v1949_v23  ;;  %v721_v26 = vmax.f32 %v575_v25, 0.0  ;;  %v1356_v15 = vld [vmem:[%s2107_s5] ss:$0 sm:$0xff]  ;;  %s1708_s5 = smov 4  }
 0x12e   :  { %v724_v16 = vmax.f32 %v586_v14, 0.0 }
 0x12f   :  { %v722_v17 = vmax.f32 %v578_v20, 0.0 }
 0x130   :  { %v1624_v18 = vpack.c.bf16 %v724_v16, %v723_v13  ;;  %1617 = vmatpush3.bf16.msra.mxu1 %v1616_v6  ;;  %v1077_v6 = vld [vmem:[%s2106_s9] sm:$0xff]  ;;  %v1080_v13 = vld [vmem:[%s2106_s9 + $0x18] sm:$0xff] }
 0x131   :  { %v1620_v19 = vpack.c.bf16 %v722_v17, %v721_v26  ;;  %v1528_v27 = vpop.f32.mrb[40].mxu0  ;;  %1619 = vmatprep.subr.bf16.mxu1 %v1969_v58  ;;  %v1646_v11 = vpack.c.bf16 %v1078_v7, %v1077_v6  ;;  %v1649_v14 = vpack.c.bf16 %v1080_v13, %v1079_v12 }
 0x132   :  { %v599_v43 = vadd.f32 %v1528_v27, %v1929_v47  ;;  %v590_v61 = vpop.f32.mrb[41].mxu0 }
 0x133   :  { %v591_v29 = vadd.f32 %v1929_v47, %v590_v61  ;;  %v1529_v30 = vpop.f32.mrb[42].mxu0 }
 0x134   :  { %v727_v31 = vmax.f32 %v599_v43, 0.0  ;;  %v602_v32 = vadd.f32 %v1529_v30, %v1929_v47  ;;  %v593_v60 = vpop.f32.mrb[43].mxu0  ;;  %1621 = vmatpush3.bf16.msra.mxu1 %v1620_v19 }
 0x135   :  { %v594_v23 = vadd.f32 %v1929_v47, %v593_v60  ;;  %1623 = vmatprep.subr.bf16.mxu1 %v1965_v55  ;;  %v725_v34 = vmax.f32 %v591_v29, 0.0  ;;  %v1252_v29 = vand.u32 127, %v755_v38 }
 0x136   :  { %v728_v33 = vmax.f32 %v602_v32, 0.0 }
 0x137   :  { %v726_v35 = vmax.f32 %v594_v23, 0.0 }
 0x138   :  { %v1632_v36 = vpack.c.bf16 %v728_v33, %v727_v31  ;;  %1625 = vmatpush3.bf16.msra.mxu1 %v1624_v18  ;;  %v1362_v18 = vld [vmem:[%s2108_s11] ss:$0 sm:$0xff] }
 0x139   :  { %v1628_v58 = vpack.c.bf16 %v726_v35, %v725_v34  ;;  %v1532_v37 = vpop.f32.mrb[44].mxu0  ;;  %1627 = vmatprep.subr.bf16.mxu1 %v1985_v28 }
 0x13a   :  { %v615_v39 = vadd.f32 %v1532_v37, %v1929_v47  ;;  %v606_v40 = vpop.f32.mrb[45].mxu0 }
 0x13b   :  { %v607_v41 = vadd.f32 %v1929_v47, %v606_v40  ;;  %v1533_v24 = vpop.f32.mrb[46].mxu0 }
 0x13c   :  { %v731_v42 = vmax.f32 %v615_v39, 0.0  ;;  %v618_v44 = vadd.f32 %v1533_v24, %v1929_v47  ;;  %v609_v45 = vpop.f32.mrb[47].mxu0  ;;  %1629 = vmatpush3.bf16.msra.mxu1 %v1628_v58 }
 0x13d   :  { %v610_v55 = vadd.f32 %v1929_v47, %v609_v45  ;;  %1631 = vmatprep.subr.bf16.mxu1 %v1981_v21  ;;  %v729_v22 = vmax.f32 %v607_v41, 0.0  ;;  %v912_v47 = vld [vmem:[%s2101_s4] sm:$0xff] }
 0x13e   :  { %v732_v48 = vmax.f32 %v618_v44, 0.0 }
 0x13f   :  { %v730_v49 = vmax.f32 %v610_v55, 0.0 }
 0x140   :  { %v1640_v50 = vpack.c.bf16 %v732_v48, %v731_v42  ;;  %1633 = vmatpush3.bf16.msra.mxu1 %v1632_v36 }
 0x141   :  { %v1636_v28 = vpack.c.bf16 %v730_v49, %v729_v22  ;;  %1635 = vmatprep.subr.bf16.mxu1 %v1997_v2 }
 0x144   :  { %1637 = vmatpush3.bf16.msra.mxu1 %v1636_v28 }
 0x145   :  { %1639 = vmatprep.subr.bf16.mxu1 %v1995_v63 }
 0x148   :  { %1641 = vmatpush3.bf16.msra.mxu1 %v1640_v50 }
 0x149   :  { %1550 = vmatprep.subr.mxu1 %v1705_v51 }
 0x14b   :  { %907 = vmatmul.mubr.f32.vlgmr.msra.gmra.mrb[18].mxu1 %v1924_v46  ;;  %v995_v46 = vld [vmem:[%s2102_s7] sm:$0xff] }
 0x14c   :  { %1551 = vmatpush3.msra.mxu1 %v912_v47  ;;  %1552 = vmatprep.mubr.msk.f32.mxu1 %vm1706_vm2, %v1705_v51 }
 0x14d   :  { %1555 = vmatprep.subr.mxu1 %v1705_v51 }
 0x1fe   :  { %v1430_v21 = vpop.f32.mrb[16].mxu1 }
 0x1ff   :  { %v1431_v52 = vpop.f32.mrb[17].mxu1 }
 0x200   :  { %v1432_v2 = vadd.f32 %v1431_v52, %v1430_v21 }
 0x21e   :  { %v1465_v53 = vpop.f32.mrb[18].mxu1 }
 0x21f   :  { %v1466_v57 = vpop.f32.mrb[19].mxu1 }
 0x220   :  { %v1467_v63 = vadd.f32 %v1466_v57, %v1465_v53 }
 0x222   :  { %v909_v59 = vadd.f32 %v1467_v63, %v1432_v2 }
 0x224   :  { %1553 = vmatmul.mubr.msk.f32.vlgmr.msra.gmra.mrb[20].mxu1 %vm920_vm3, %v909_v59 }
 0x225   :  { %1556 = vmatpush3.msra.mxu1 %v995_v46  ;;  %1557 = vmatprep.mubr.msk.f32.mxu1 %vm1706_vm2, %v1705_v51 }
 0x226   :  { %1642 = vmatprep.subr.bf16.mxu1 %v1707_v3 }
 0x228   :  { %1558 = vmatmul.mubr.msk.f32.vlgmr.msra.gmra.mrb[22].mxu1 %vm920_vm3, %v994_v62 }
 0x229   :  { %1564 = vmatprep.mubr.msk.f32.mxu1 %vm1706_vm2, %v1705_v51  ;;  %1644 = vmatpush3.bf16.msra.mxu1 %v1643_v1 }
 0x22a   :  { %1645 = vmatprep.subr.bf16.mxu1 %v1707_v3 }
 0x2f7   :  { %v990_v4 = vpop.f32.mrb[20].mxu1 }
 0x2f8   :  { %v1554_v54 = vpop.f32.mrb[21].mxu1  ;;  %v991_v20 = vadd.f32 %v1356_v15, %v990_v4 }
 0x2fb   :  { %v1072_v8 = vpop.f32.mrb[22].mxu1 }
 0x2fc   :  { %v1073_v9 = vadd.f32 %v1358_v5, %v1072_v8  ;;  %v1559_v10 = vpop.f32.mrb[23].mxu1 }
 0x2fe   :  { %v1076_v25 = vmax.f32 %v1073_v9, 0.0 }
 0x300   :  { %1565 = vmatmul.mubr.msk.f32.vlgmr.msra.gmra.mrb[24].mxu1 %vm1083_vm4, %v1076_v25 }
 0x301   :  { %1647 = vmatpush3.bf16.msra.mxu1 %v1646_v11  ;;  %1575 = vmatprep.mubr.msk.f32.mxu1 %vm1706_vm2, %v1705_v51 }
 0x302   :  { %1648 = vmatprep.subr.bf16.mxu1 %v1707_v3 }
 0x305   :  { %1650 = vmatpush3.bf16.msra.mxu1 %v1649_v14 }
 0x308   :  { %1576 = vmatmul.mubr.msk.f32.vlgmr.msra.gmra.mrb[26].mxu1 %vm1157_vm5, %v991_v20 }
 0x3d3   :  { %v1153_v16 = vpop.f32.mrb[24].mxu1 }
 0x3d4   :  { %v1566_v26 = vpop.f32.mrb[25].mxu1 }
 0x3db   :  { %v1227_v17 = vpop.f32.mrb[26].mxu1 }
 0x3dc   :  { %v1228_v19 = vadd.f32 %v1227_v17, %v1153_v16  ;;  %v1577_v27 = vpop.f32.mrb[27].mxu1 }
 0x3de   :  { %v1238_v43 = vadd.f32 %v1362_v18, %v1228_v19 }
 0x3e0   :  { %v1240_v61 = vsel %vm1239_vm6, %v1238_v43, -inf }
 0x3e1   :  { %1241 = vmax.xlane.f32.xlu0 %v1240_v61 }
 0x46e   :  { %v1242_v30 = vpop.xlane.xlu0 %1241 }
 0x46f   :  { %v1243_v31 = vsub.f32 %v1238_v43, %v1242_v30  ;;  %vm1253_vm7 = vcmp.eq.f32.partialorder %v1238_v43, %v1242_v30 }
 0x470   :  { %v1254_v32 = vsel %vm1253_vm7, %v1252_v29, 4 }
 0x471   :  { %v1244_v60 = vmul.f32 1.442695, %v1243_v31  ;;  %v1255_v23 = vsel %vm1239_vm6, %v1254_v32, 2147483647 }
 0x472   :  { %v1257_v33 = vshra.s32 %v1255_v23, 16  ;;  %v1256_v58 = vand.u32 65535, %v1255_v23 }
 0x473   :  { %1700 = vpow2.f32 %v1244_v60 }
 0x474   :  { %v1259_v34 = vcvt.s32.f32 %v1257_v33  ;;  %v1258_v39 = vcvt.s32.f32 %v1256_v58 }
 0x476   :  { %1260 = vmin.xlane.f32.xlu0 %v1259_v34 }
 0x47d   :  { %v1701_v35 = vpop.eup %1700 }
 0x47e   :  { %v1246_v36 = vsel %vm1239_vm6, %v1701_v35, 0.0 }
 0x47f   :  { %1247 = vadd.xlane.f32.xlu1 %v1246_v36 }
 0x503   :  { %v1261_v37 = vpop.xlane.xlu0 %1260 }
 0x504   :  { %vm1262_vm8 = vcmp.eq.f32.partialorder %v1259_v34, %v1261_v37  ;;  %v1267_v45 = vcvt.f32.s32 %v1261_v37 }
 0x505   :  { %v1263_v38 = vsel %vm1262_vm8, %v1258_v39, inf }
 0x506   :  { %1264 = vmin.xlane.f32.xlu1 %v1263_v38  ;;  %v1268_v48 = vshll.u32 %v1267_v45, 16 }
 0x50c   :  { %v1248_v40 = vpop.xlane.xlu1 %1247 }
 0x50d   :  { %1702 = vrcp.f32 %v1248_v40 }
 0x517   :  { %v1703_v41 = vpop.eup %1702 }
 0x518   :  { %v1250_v24 = vmul.f32 %v1703_v41, %v1701_v35 }
 0x51a   :  { %1273 = vrot.lane.b32.xlu0 %v1250_v24, %s1708_s5 }
 0x58c   :  { %v1274_v42 = vpop.permute.xlu0 %1273 }
 0x58d   :  { %v1277_v44 = vsel %vm1276_vm9, %v1238_v43, %v1274_v42 }
 0x58e   :  { %1279 = vst.msk [vmem:[%s2109_s12] sm:$0x3] %vm1278_vm10, %v1277_v44 }
 0x593   :  { %v1265_v55 = vpop.xlane.xlu1 %1264 }
 0x594   :  { %v1266_v22 = vcvt.f32.s32 %v1265_v55 }
 0x596   :  { %v1269_v49 = vadd.s32 %v1268_v48, %v1266_v22 }
 0x598   :  { %1271 = vst.msk [vmem:[%s2110_s13] sm:$0x3] %vm1270_vm11, %v1269_v49 }

</bundles_post_ra>
